<compile_context>
chip_gen: v7x
topology: tpu7x:2x2x1
jax: 0.10.0
libtpu: 0.0.40
codegen_flags: <defaults>
</compile_context>

<pallas_src>
import functools

import jax
import jax.numpy as jnp
from jax.experimental import pallas as pl
from jax.experimental.pallas import tpu as pltpu

_MIB = 1024 * 1024


def _vmem_limit_bytes():
    """Generation-aware scoped-VMEM limit (90% of physical VMEM, capped at 128 MiB)."""
    cap = 64 * _MIB                               # conservative default (v7x per-TC VMEM)
    try:
        info = pltpu.get_tpu_info()
        cap = int(getattr(info, "vmem_capacity_bytes", cap)) or cap
    except Exception:
        pass
    cap = min(cap, 128 * _MIB)
    return int(cap * 0.9)


def _band_matrix(c, w3):
    """(C, C) banded matrix M such that z = M @ s is the zero-padded k=3 channel conv."""
    i = jnp.arange(c)[:, None]
    j = jnp.arange(c)[None, :]
    d = j - i
    w = w3.astype(jnp.float32)
    return (jnp.where(d == -1, w[0], 0.0)
            + jnp.where(d == 0, w[1], 0.0)
            + jnp.where(d == 1, w[2], 0.0))


# ------------------- primary path: fused sum + conv + sigmoid + scale ------------------
def _fused_kernel(band_ref, x_ref, o_ref, *, inv_hw):
    # band_ref: (C, C) f32 banded conv matrix (constant index_map -> stays resident).
    # x_ref / o_ref: one full (C, HW) batch row (squeezed batch dim).
    s = jnp.sum(x_ref[...].astype(jnp.float32), axis=-1, keepdims=True)       # (C, 1)
    z = jnp.dot(band_ref[...], s, preferred_element_type=jnp.float32) * inv_hw
    gate = jax.nn.sigmoid(z)                                                   # (C, 1)
    o_ref[...] = (x_ref[...] * gate.astype(o_ref.dtype)).astype(o_ref.dtype)


def _fused_forward(x3, band, vmem_limit):
    b, c, hw = x3.shape
    return pl.pallas_call(
        functools.partial(_fused_kernel, inv_hw=1.0 / hw),
        out_shape=jax.ShapeDtypeStruct((b, c, hw), x3.dtype),
        grid=(b,),
        in_specs=[
            pl.BlockSpec((c, c), lambda i: (0, 0)),           # band: resident in VMEM
            pl.BlockSpec((None, c, hw), lambda i: (i, 0, 0)),
        ],
        out_specs=pl.BlockSpec((None, c, hw), lambda i: (i, 0, 0)),
        compiler_params=pltpu.CompilerParams(
            dimension_semantics=("parallel",),
            vmem_limit_bytes=vmem_limit),
    )(band, x3)


# ---------------------- fallback path A: per-channel spatial sums ----------------------
def _chan_sum_kernel(x_ref, o_ref):
    @pl.when(pl.program_id(1) == 0)
    def _():
        o_ref[...] = jnp.zeros_like(o_ref)
    o_ref[...] += jnp.sum(x_ref[...].astype(jnp.float32), axis=-1, keepdims=True)


def _channel_sums(x3, hw_t, vmem_limit):
    b, c, hw = x3.shape
    return pl.pallas_call(
        _chan_sum_kernel,
        out_shape=jax.ShapeDtypeStruct((b, c, 1), jnp.float32),
        grid=(b, hw // hw_t),
        in_specs=[pl.BlockSpec((1, c, hw_t), lambda i, j: (i, 0, j))],
        out_specs=pl.BlockSpec((1, c, 1), lambda i, j: (i, 0, 0)),
        compiler_params=pltpu.CompilerParams(
            dimension_semantics=("parallel", "arbitrary"),
            vmem_limit_bytes=vmem_limit),
    )(x3)


# --------------------------- fallback path B: x * gate scale ---------------------------
def _scale_kernel(g_ref, x_ref, o_ref):
    o_ref[...] = (x_ref[...] * g_ref[...].astype(o_ref.dtype)).astype(o_ref.dtype)


def _scale(x3, gate, hw_t, vmem_limit):
    b, c, hw = x3.shape
    n_hw = hw // hw_t
    gate_map = lambda t: (t // n_hw, 0, 0)
    x_map = lambda t: (t // n_hw, 0, t % n_hw)
    return pl.pallas_call(
        _scale_kernel,
        out_shape=jax.ShapeDtypeStruct((b, c, hw), x3.dtype),
        grid=(b * n_hw,),                          # flat parallel grid: megacore-friendly
        in_specs=[pl.BlockSpec((1, c, 1), gate_map),
                  pl.BlockSpec((1, c, hw_t), x_map)],
        out_specs=pl.BlockSpec((1, c, hw_t), x_map),
        compiler_params=pltpu.CompilerParams(
            dimension_semantics=("parallel",),
            vmem_limit_bytes=vmem_limit),
    )(gate, x3)


def _gate_from_sums(sums, w3, hw, out_dtype):
    """Tiny (B, C) gate = sigmoid(conv_k3(mean)); hoisted into XLA glue (fused away)."""
    m = sums[..., 0] * (1.0 / hw)                              # (B, C) channel means
    mp = jnp.pad(m, ((0, 0), (1, 1)))
    w = w3.astype(jnp.float32)
    z = w[0] * mp[:, :-2] + w[1] * mp[:, 1:-1] + w[2] * mp[:, 2:]
    return jax.nn.sigmoid(z)[..., None].astype(out_dtype)      # (B, C, 1)


def _choose_hw_tiling(hw, c, itemsize, block_cap_bytes):
    """Return (hw_pad, hw_t): lane extent (maybe padded) and a tile that divides it.
    The tile is either the full extent or a multiple of 128 (lane-dense stores)."""
    cap = max(128, block_cap_bytes // max(1, c * itemsize))
    if hw <= cap:
        return hw, hw

    def best_tile(extent):
        best = 0
        for t in range(128, min(extent, cap) + 1, 128):
            if extent % t == 0:
                best = t
        return best

    t = best_tile(hw)
    if t:
        return hw, t
    hw_pad = ((hw + 127) // 128) * 128             # zero pad: sum-neutral, sliced off later
    return hw_pad, (best_tile(hw_pad) or 128)


# ---------------------------------------- forward --------------------------------------
@functools.partial(jax.jit, static_argnames=("force_fallback", "block_cap_bytes"))
def net_bn_forward(x, w3, *, force_fallback=False, block_cap_bytes=None):
    """x: (B, C, H, W) NCHW; w3: (3,) = Conv1d(1, 1, k=3, pad=1, bias=False) weights."""
    # TODO(synk): Net_bn constructs self.bn = BatchNorm2d(channel) but never applies it
    # in forward(), so no BatchNorm is applied here (matches the reference forward).
    b, c, h, w = x.shape
    hw = h * w
    x3 = x.reshape(b, c, hw)                       # free view: C on sublanes, HW on lanes
    isz = x.dtype.itemsize
    vmem_limit = _vmem_limit_bytes()

    # Fused single-pass working set per grid step:
    #   2x input + 2x output row buffers + f32 reduce temp + resident band + slack.
    fused_need = 4 * c * hw * isz + 4 * c * hw + 8 * c * c + 2 * _MIB
    if (not force_fallback) and fused_need <= vmem_limit:
        band = _band_matrix(c, w3)
        out = _fused_forward(x3, band, vmem_limit)
        return out.reshape(b, c, h, w)

    # Fallback: rows too large to keep resident -> two passes over x.
    block_cap = block_cap_bytes or min(8 * _MIB, vmem_limit // 8)
    hw_pad, hw_t = _choose_hw_tiling(hw, c, isz, block_cap)
    xw = x3 if hw_pad == hw else jnp.pad(x3, ((0, 0), (0, 0), (0, hw_pad - hw)))
    sums = _channel_sums(xw, hw_t, vmem_limit)                 # (B, C, 1) f32 (pad-neutral)
    gate = _gate_from_sums(sums, w3, hw, x.dtype)              # (B, C, 1), hoisted to XLA
    out = _scale(xw, gate, hw_t, vmem_limit)
    if hw_pad != hw:
        out = out[:, :, :hw]
    return out.reshape(b, c, h, w)


# -------------------------------- plain-JAX reference -----------------------------------
def _reference(x, w3):
    m = jnp.mean(x.astype(jnp.float32), axis=(2, 3))           # (B, C)
    mp = jnp.pad(m, ((0, 0), (1, 1)))
    z = w3[0] * mp[:, :-2] + w3[1] * mp[:, 1:-1] + w3[2] * mp[:, 2:]
    gate = jax.nn.sigmoid(z)
    return x * gate[:, :, None, None].astype(x.dtype)


if __name__ == "__main__":
    key = jax.random.PRNGKey(0)
    kx, kw = jax.random.split(key)
    B, C, H, W = 2, 32, 16, 16                     # small shapes: batch=2, channel=32, 16x16
    x = jax.random.normal(kx, (B, C, H, W), jnp.float32)
    w3 = jax.random.normal(kw, (3,), jnp.float32) * 0.5

    ref = _reference(x, w3)

    # 1) primary fused single-pass path
    out = jax.block_until_ready(net_bn_forward(x, w3))
    assert out.shape == (B, C, H, W)
    assert bool(jnp.all(jnp.isfinite(out)))
    assert bool(jnp.allclose(out, ref, rtol=1e-4, atol=1e-4)), \
        float(jnp.max(jnp.abs(out - ref)))

    # 2) fallback 2-pass path (single HW tile)
    out_fb = jax.block_until_ready(net_bn_forward(x, w3, force_fallback=True))
    assert bool(jnp.allclose(out_fb, ref, rtol=1e-4, atol=1e-4)), \
        float(jnp.max(jnp.abs(out_fb - ref)))

    # 3) fallback 2-pass path with tiny block cap -> multi-tile HW accumulation
    out_mt = jax.block_until_ready(
        net_bn_forward(x, w3, force_fallback=True, block_cap_bytes=16 * 1024))
    assert bool(jnp.allclose(out_mt, ref, rtol=1e-4, atol=1e-4)), \
        float(jnp.max(jnp.abs(out_mt - ref)))

    print("KERNEL_OK")
</pallas_src>

<mosaic_0001>
module attributes {stable_mosaic.version = 11 : i64} {
  func.func @_fused_kernel(%arg0: i32, %arg1: memref<32x32xf32, #tpu.memory_space<vmem>>, %arg2: memref<1x32x256xf32, #tpu.memory_space<vmem>>, %arg3: memref<1x32x256xf32, #tpu.memory_space<vmem>>) attributes {dimension_semantics = [#tpu.dimension_semantics<parallel>], iteration_bounds = array<i64: 2>, scalar_prefetch = 0 : i64, scratch_operands = 0 : i64, tpu.core_type = #tpu.core_type<tc>, window_params = [{pipeline_mode = #tpu.pipeline_mode<synchronous>, transform_indices = @transform_0, window_bounds = array<i64: 32, 32>}, {transform_indices = @transform_1, window_bounds = array<i64: 1, 32, 256>}, {transform_indices = @transform_2, window_bounds = array<i64: 1, 32, 256>}]} {
    %c0 = arith.constant 0 : index
    %c0_0 = arith.constant 0 : index
    %c0_1 = arith.constant 0 : index
    %0 = vector.load %arg2[%c0, %c0_0, %c0_1] : memref<1x32x256xf32, #tpu.memory_space<vmem>>, vector<1x32x256xf32>
    %1 = vector.shape_cast %0 : vector<1x32x256xf32> to vector<32x256xf32>
    %cst = arith.constant dense<0.000000e+00> : vector<32xf32>
    %2 = vector.multi_reduction <add>, %1, %cst [1] : vector<32x256xf32> to vector<32xf32>
    %3 = vector.shape_cast %2 : vector<32xf32> to vector<32x1xf32>
    %c0_2 = arith.constant 0 : index
    %c0_3 = arith.constant 0 : index
    %4 = vector.load %arg1[%c0_2, %c0_3] : memref<32x32xf32, #tpu.memory_space<vmem>>, vector<32x32xf32>
    %cst_4 = arith.constant dense<0.000000e+00> : vector<32x1xf32>
    %5 = tpu.matmul %4, %3, %cst_4 {dimension_numbers = #tpu.dot_dimension_numbers<[1], [0], [0], [1], [0, 0, 1, 1], [], []>} : vector<32x32xf32>, vector<32x1xf32>, vector<32x1xf32> -> vector<32x1xf32>
    %cst_5 = arith.constant 3.906250e-03 : f32
    %6 = vector.broadcast %cst_5 : f32 to vector<32x1xf32>
    %7 = arith.mulf %5, %6 : vector<32x1xf32>
    %8 = arith.negf %7 : vector<32x1xf32>
    %9 = math.exp %8 : vector<32x1xf32>
    %cst_6 = arith.constant 1.000000e+00 : f32
    %10 = vector.broadcast %cst_6 : f32 to vector<32x1xf32>
    %11 = arith.addf %10, %9 : vector<32x1xf32>
    %12 = arith.divf %10, %11 : vector<32x1xf32>
    %c0_7 = arith.constant 0 : index
    %c0_8 = arith.constant 0 : index
    %c0_9 = arith.constant 0 : index
    %13 = vector.load %arg2[%c0_7, %c0_8, %c0_9] : memref<1x32x256xf32, #tpu.memory_space<vmem>>, vector<1x32x256xf32>
    %14 = vector.shape_cast %13 : vector<1x32x256xf32> to vector<32x256xf32>
    %15 = vector.broadcast %12 : vector<32x1xf32> to vector<32x256xf32>
    %16 = arith.mulf %14, %15 : vector<32x256xf32>
    %c0_10 = arith.constant 0 : index
    %c0_11 = arith.constant 0 : index
    %c0_12 = arith.constant 0 : index
    %17 = vector.load %arg3[%c0_10, %c0_11, %c0_12] : memref<1x32x256xf32, #tpu.memory_space<vmem>>, vector<1x32x256xf32>
    %18 = vector.shape_cast %17 : vector<1x32x256xf32> to vector<32x256xf32>
    %19 = vector.shape_cast %16 : vector<32x256xf32> to vector<1x32x256xf32>
    tpu.vector_store %arg3[%c0_10, %c0_11, %c0_12], %19 {strides = array<i32>} : memref<1x32x256xf32, #tpu.memory_space<vmem>>, vector<1x32x256xf32>,
    return
  }
  func.func @transform_0(%arg0: i32) -> (i32, i32) {
    %c0_i32 = arith.constant 0 : i32
    %c0_i32_0 = arith.constant 0 : i32
    %c0_i32_1 = arith.constant 0 : i32
    return %c0_i32, %c0_i32_0 : i32, i32
  }
  func.func @transform_1(%arg0: i32) -> (i32, i32, i32) {
    %c0_i32 = arith.constant 0 : i32
    %c0_i32_0 = arith.constant 0 : i32
    %c0_i32_1 = arith.constant 0 : i32
    return %arg0, %c0_i32, %c0_i32_0 : i32, i32, i32
  }
  func.func @transform_2(%arg0: i32) -> (i32, i32, i32) {
    %c0_i32 = arith.constant 0 : i32
    %c0_i32_0 = arith.constant 0 : i32
    %c0_i32_1 = arith.constant 0 : i32
    return %arg0, %c0_i32, %c0_i32_0 : i32, i32, i32
  }
}

</mosaic_0001>

<bundles_post_ra>
// kernel: net_bn_forward.1
= control target key start
LH: loop header
LB: loop body
LE: loop exit
PB: predicated region body
PF: predicated region fallthrough
CT: control target
= control target key end

     0   :  { %s491_s9 = smov 0   ;;  %s563_s0 = inlined_call_operand.vmem [shape: f32[32,32], index: 0, kind: input, shape index: {}]   ;;  %s564_s1 = inlined_call_operand.vmem [shape: f32[2,32,256], index: 1, kind: input, shape index: {}]   ;;  %s565_s2 = inlined_call_operand.vmem [shape: f32[2,32,256], index: 2, kind: output, shape index: {}]  }
   0x1 LB: > { %s385_s10 = sadd.s32 4294967295, %s473_s9   ;;  %p389_p0 = scmp.ge.s32.totalorder %s473_s9, 1  ;;  %s473_s9 = sphi %s491_s9, %s12_s9  }
   0x2   : > { %p112_p1 = scmp.lt.s32.totalorder %s473_s9, 3 }
   0x4   : > { %p113_p2 = pnand %p389_p0, %p112_p1 }
   0x5   : > { %p134_p3 = scmp.lt.s32.totalorder (!%p113_p2), %s385_s10, 1  ;;  %v164_v12 = vld [vmem:[%s563_s0] sm:$0xff] (!%p113_p2)  ;;  %vm168_vm0 = vcmask (!%p113_p2), 261120   ;;  %v166_v13 = vld [vmem:[%s563_s0 + $0x10] sm:$0xff] (!%p113_p2)  ;;  %v165_v20 = vld [vmem:[%s563_s0 + $0x8] sm:$0xff] (!%p113_p2)  ;;  %v475_v22 = vmov (!%p113_p2), 0  }
   0x6   : > { %116 = sbr.rel (%p113_p2) target bundleno = 555 (0x22b), region = 28  ;;  %422 = vmatprep.mubr.msk.f32.mxu0 (!%p113_p2), %vm168_vm0, %v164_v12  ;;  %425 = vmatprep.mubr.msk.f32.mxu1 (!%p113_p2), %vm168_vm0, %v166_v13  ;;  %v167_v21 = vld [vmem:[%s563_s0 + $0x18] sm:$0xff] (!%p113_p2) }
   0x7   : > { %450 = vset.pattern.permute.xlu1 (!%p113_p2), %v475_v22  ;;  %449 = vset.pattern.permute.xlu0 (!%p113_p2), %v475_v22 }
   0xd   : > { %s567_s10 = smov (!%p134_p3, %s385_s10), 1 }
   0xe   : > { %s404_s11 = sshll.u32 %s567_s10, 6 }
   0xf   : > { %s138_s14 = scalar_lea.vmem %s564_s1, %s404_s11  ;;  %s143_s25 = scalar_lea.vmem %s565_s2, %s404_s11 }
  0x10   : > { %v507_v0 = vld [vmem:[%s138_s14 + $0x20] sm:$0xff]  ;;  %v509_v1 = vld [vmem:[%s138_s14 + $0x28] sm:$0xff]  ;;  %v517_v5 = vld [vmem:[%s138_s14 + $0x30] sm:$0xff] }
  0x11   : > { %v511_v2 = vld [vmem:[%s138_s14] sm:$0xff]  ;;  %v158_v3 = vadd.f32 %v509_v1, %v507_v0  ;;  %v515_v4 = vld [vmem:[%s138_s14 + $0x8] sm:$0xff]  ;;  %v519_v6 = vld [vmem:[%s138_s14 + $0x38] sm:$0xff] }
  0x12   : > { %v152_v7 = vadd.f32 %v515_v4, %v511_v2  ;;  %v523_v8 = vld [vmem:[%s138_s14 + $0x10] sm:$0xff]  ;;  %v525_v9 = vld [vmem:[%s138_s14 + $0x18] sm:$0xff]  ;;  %v161_v10 = vadd.f32 %v519_v6, %v517_v5 }
  0x13   : > { %159 = vadd.xlane.f32.xlu1 %v158_v3  ;;  %v155_v11 = vadd.f32 %v525_v9, %v523_v8 }
  0x14   : > { %153 = vadd.xlane.f32.xlu0 %v152_v7 }
  0x17   : > { %162 = vadd.xlane.f32.xlu1 %v161_v10 }
  0x18   : > { %156 = vadd.xlane.f32.xlu0 %v155_v11 }
  0xa0   : > { %v160_v14 = vpop.xlane.xlu1 %159 }
  0xa1   : > { %v154_v15 = vpop.xlane.xlu0 %153 }
  0xa4   : > { %v163_v16 = vpop.xlane.xlu1 %162 }
  0xa5   : > { %v157_v17 = vpop.xlane.xlu0 %156  ;;  %v432_v19 = vpack.c.bf16 %v163_v16, %v160_v14 }
  0xa6   : > { %v428_v18 = vpack.c.bf16 %v157_v17, %v154_v15 }
  0xa8   : > { %429 = vmatprep.subr.bf16.mxu0 %v428_v18  ;;  %436 = vmatprep.subr.bf16.mxu1 %v428_v18 }
  0xa9   : > { %431 = vmatpush3.bf16.msra.mxu0 %v428_v18  ;;  %438 = vmatpush3.bf16.msra.mxu1 %v428_v18 }
  0xaa   : > { %433 = vmatprep.subr.bf16.mxu0 %v432_v19  ;;  %437 = vmatprep.subr.bf16.mxu1 %v432_v19 }
  0xad   : > { %435 = vmatpush3.bf16.msra.mxu0 %v432_v19  ;;  %439 = vmatpush3.bf16.msra.mxu1 %v432_v19 }
  0xb0   : > { %423 = vmatmul.mubr.msk.f32.vlgmr.msra.gmra.mrb[0].mxu0 %vm168_vm0, %v165_v20  ;;  %426 = vmatmul.mubr.msk.f32.vlgmr.msra.gmra.mrb[0].mxu1 %vm168_vm0, %v167_v21 }
 0x183   : > { %v424_v23 = vpop.f32.mrb[0].mxu0  ;;  %v427_v24 = vpop.f32.mrb[0].mxu1 }
 0x184   : > { %v399_v25 = vmul.f32 -0.00390625, %v424_v23  ;;  %v247_v26 = vpop.f32.mrb[1].mxu0  ;;  %v401_v27 = vmul.f32 -0.00390625, %v427_v24  ;;  %v257_v28 = vpop.f32.mrb[1].mxu1 }
 0x185   : > { %v398_v29 = vmul.f32 -0.00390625, %v247_v26  ;;  %v400_v30 = vmul.f32 -0.00390625, %v257_v28 }
 0x186   : > { %v276_v31 = vmul.f32 1.442695, %v399_v25  ;;  %v280_v34 = vmul.f32 1.442695, %v401_v27 }
 0x187   : > { %v274_v32 = vmul.f32 1.442695, %v398_v29  ;;  %v278_v33 = vmul.f32 1.442695, %v400_v30 }
 0x188   : > { %451 = vpow2.f32 %v276_v31 }
 0x189   : > { %453 = vpow2.f32 %v274_v32 }
 0x18a   : > { %455 = vpow2.f32 %v278_v33 }
 0x18b   : > { %457 = vpow2.f32 %v280_v34 }
 0x192   : > { %v452_v35 = vpop.eup %451 }
 0x193   : > { %v454_v36 = vpop.eup %453  ;;  %v283_v37 = vadd.f32 1.0, %v452_v35 }
 0x194   : > { %v282_v38 = vadd.f32 1.0, %v454_v36  ;;  %v456_v39 = vpop.eup %455 }
 0x195   : > { %459 = vrcp.f32 %v283_v37  ;;  %v458_v40 = vpop.eup %457  ;;  %v284_v41 = vadd.f32 1.0, %v456_v39 }
 0x196   : > { %461 = vrcp.f32 %v282_v38  ;;  %v285_v42 = vadd.f32 1.0, %v458_v40 }
 0x197   : > { %463 = vrcp.f32 %v284_v41 }
 0x198   : > { %465 = vrcp.f32 %v285_v42 }
 0x19f   : > { %v460_v43 = vpop.eup %459 }
 0x1a0   : > { %v462_v44 = vpop.eup %461  ;;  %301 = vperm.xlu1 %450, %v460_v43  }
 0x1a1   : > { %296 = vperm.xlu0 %449, %v462_v44   ;;  %v464_v45 = vpop.eup %463 }
 0x1a2   : > { %v466_v46 = vpop.eup %465 }
 0x1a4   : > { %306 = vperm.xlu1 %450, %v464_v45  }
 0x1a8   : > { %311 = vperm.xlu1 %450, %v466_v46  }
 0x21f   : > { %v302_v47 = vpop.permute.xlu1 %301 }
 0x220   : > { %v316_v48 = vmul.f32 %v302_v47, %v523_v8  ;;  %v317_v49 = vmul.f32 %v302_v47, %v525_v9  ;;  %v297_v50 = vpop.permute.xlu0 %296 }
 0x221   : > { %v314_v51 = vmul.f32 %v297_v50, %v511_v2  ;;  %v315_v52 = vmul.f32 %v297_v50, %v515_v4 }
 0x222   : > { %324 = vst [vmem:[%s143_s25 + $0x10] sm:$0xff] %v316_v48  ;;  %325 = vst [vmem:[%s143_s25 + $0x18] sm:$0xff] %v317_v49 }
 0x223   : > { %322 = vst [vmem:[%s143_s25] sm:$0xff] %v314_v51  ;;  %323 = vst [vmem:[%s143_s25 + $0x8] sm:$0xff] %v315_v52  ;;  %v307_v53 = vpop.permute.xlu1 %306 }
 0x224   : > { %v318_v54 = vmul.f32 %v307_v53, %v507_v0  ;;  %v319_v55 = vmul.f32 %v307_v53, %v509_v1 }
 0x226   : > { %326 = vst [vmem:[%s143_s25 + $0x20] sm:$0xff] %v318_v54  ;;  %327 = vst [vmem:[%s143_s25 + $0x28] sm:$0xff] %v319_v55 }
 0x227   : > { %v312_v56 = vpop.permute.xlu1 %311 }
 0x228   : > { %v320_v57 = vmul.f32 %v312_v56, %v517_v5  ;;  %v321_v58 = vmul.f32 %v312_v56, %v519_v6 }
 0x22a   : > { %328 = vst [vmem:[%s143_s25 + $0x30] sm:$0xff] %v320_v57  ;;  %329 = vst [vmem:[%s143_s25 + $0x38] sm:$0xff] %v321_v58 }
 0x22b PF: > { %s12_s9 = sadd.s32 1, %s473_s9  }
 0x22c   : > { %p9_p4 = scmp.ge.s32.totalorder %s12_s9, 4  }
 0x22e   :  { %11 = sbr.rel (!%p9_p4) target bundleno = 1 (0x1), region = 58 }

</bundles_post_ra>
